<compile_context>
chip_gen: v7x
topology: tpu7x:2x2x1
jax: 0.10.0
libtpu: 0.0.40
codegen_flags: <defaults>
</compile_context>

<pallas_src>
import jax
import jax.numpy as jnp
from jax.experimental import pallas as pl
from jax.experimental.pallas import tpu as pltpu


_LANE = 128


def _round_up(n, m):
    return ((n + m - 1) // m) * m


def _slab_layout(num_outputs):
    """Column layout of the fused, lane-dense output slab."""
    value_off = 0
    mu_off = 1
    std_off = 1 + num_outputs
    slab_width = max(_LANE, _round_up(1 + 2 * num_outputs, _LANE))
    return value_off, mu_off, std_off, slab_width


def _choose_tile_b(batch):
    """Rows per grid step: big tiles to amortize per-step overhead, but >=2
    steps on large batches so v7x's two TensorCores both get work; never go
    below ~256 rows just to create extra steps."""
    b8 = _round_up(batch, 8)
    if b8 <= 512:
        return b8                               # small batch: one step
    half = _round_up((batch + 1) // 2, 8)
    return max(256, min(1024, half))            # 256..1024 rows, >=2 steps


def _fused_actor_critic_kernel(
        x_ref,
        w1_ref, b1_ref,          # shared layer 1: [in, 2*hidden] = [critic | actor]
        w2_ref, b2_ref,          # block-diag layer 2: [2*hidden, 512]
        w3c_ref, b3c_ref, w3a_ref, b3a_ref,     # [256, 256] each
        w4c_ref, w4a_ref, b4_ref,               # [256, SLAB] x2; b4 holds exp(log_std)
        out_ref):                               # [TILE_B, SLAB]
    xb = x_ref[...].astype(jnp.bfloat16)

    # Layer 1: both branches consume x -> one matmul on concatenated weights.
    h1 = jnp.maximum(
        jnp.dot(xb, w1_ref[...], preferred_element_type=jnp.float32) + b1_ref[...],
        0.0)

    # Layer 2: block-diagonal weights -> single matmul on intact h1, then a
    # 128-aligned split at lane 256 (critic | actor).
    h2 = jnp.maximum(
        jnp.dot(h1.astype(jnp.bfloat16), w2_ref[...],
                preferred_element_type=jnp.float32) + b2_ref[...],
        0.0)
    h2c = h2[:, :256].astype(jnp.bfloat16)
    h2a = h2[:, 256:].astype(jnp.bfloat16)

    # Layer 3.
    h3c = jnp.maximum(
        jnp.dot(h2c, w3c_ref[...], preferred_element_type=jnp.float32) + b3c_ref[...],
        0.0)
    h3a = jnp.maximum(
        jnp.dot(h2a, w3a_ref[...], preferred_element_type=jnp.float32) + b3a_ref[...],
        0.0)

    # Layer 4: two dots summed into the lane-dense slab (no [B,512] concat
    # copy).  std lanes of w4c/w4a are zero; exp(log_std) lives in b4.
    slab = (jnp.dot(h3c.astype(jnp.bfloat16), w4c_ref[...],
                    preferred_element_type=jnp.float32)
            + jnp.dot(h3a.astype(jnp.bfloat16), w4a_ref[...],
                      preferred_element_type=jnp.float32)
            + b4_ref[...])

    out_ref[...] = slab.astype(out_ref.dtype)


def actor_critic_forward(packed, x):
    """Fused forward.  Returns ((mu, std), value).

    # TODO(synk): torch.distributions.Normal has no Pallas/JAX-array
    # equivalent; the distribution is returned as its parameters (mu, std).
    """
    num_outputs = packed["log_std"].shape[1]       # shape metadata only
    val_off, mu_off, std_off, slab = _slab_layout(num_outputs)

    batch, num_inputs = x.shape
    tile_b = _choose_tile_b(batch)
    padded_b = _round_up(batch, tile_b)
    if padded_b != batch:
        x = jnp.pad(x, ((0, padded_b - batch), (0, 0)))
    grid = (padded_b // tile_b,)

    def weight_spec(a):
        # Full block, constant index -> stays resident in VMEM across the grid.
        return pl.BlockSpec(a.shape, lambda i: (0, 0))

    def row_spec(feat):
        return pl.BlockSpec((tile_b, feat), lambda i: (i, 0))

    args = (
        x,
        packed["w1"], packed["b1"],
        packed["w2"], packed["b2"],
        packed["w3c"], packed["b3c"], packed["w3a"], packed["b3a"],
        packed["w4c"], packed["w4a"], packed["b4"],
    )
    in_specs = [row_spec(num_inputs)] + [weight_spec(a) for a in args[1:]]

    out = pl.pallas_call(
        _fused_actor_critic_kernel,
        out_shape=jax.ShapeDtypeStruct((padded_b, slab), jnp.float32),
        grid=grid,
        in_specs=in_specs,
        out_specs=row_spec(slab),
        compiler_params=pltpu.CompilerParams(
            dimension_semantics=("parallel",),      # batch tiles shard across v7x TCs
            vmem_limit_bytes=48 * 1024 * 1024,      # explicit (v5e default is 16 MiB)
        ),
    )(*args)

    value = out[:batch, val_off:val_off + 1]
    mu = out[:batch, mu_off:mu_off + num_outputs]
    std = out[:batch, std_off:std_off + num_outputs]
    return (mu, std), value


def init_actor_critic_params(key, num_inputs, num_outputs, hidden_size, std=0.0):
    """PyTorch nn.Linear-style init; raw f32 params in [in, out] layout."""
    def linear(k, fan_in, fan_out):
        kw, kb = jax.random.split(k)
        bound = 1.0 / jnp.sqrt(jnp.float32(fan_in))
        w = jax.random.uniform(kw, (fan_in, fan_out), jnp.float32, -bound, bound)
        b = jax.random.uniform(kb, (1, fan_out), jnp.float32, -bound, bound)
        return w, b

    keys = jax.random.split(key, 8)
    critic = [linear(keys[0], num_inputs, hidden_size),
              linear(keys[1], hidden_size, 256),
              linear(keys[2], 256, 256),
              linear(keys[3], 256, 1)]
    actor = [linear(keys[4], num_inputs, hidden_size),
             linear(keys[5], hidden_size, 256),
             linear(keys[6], 256, 256),
             linear(keys[7], 256, num_outputs)]
    log_std = jnp.full((1, num_outputs), std, dtype=jnp.float32)
    return {"critic": critic, "actor": actor, "log_std": log_std}


def pack_params(raw):
    """Repack raw params for the fused kernel: bf16 weights, concatenated
    layer-1, block-diagonal layer-2, lane-padded layer-4 with exp(log_std)
    folded into the bias.  Re-run this whenever log_std changes."""
    (w1c, b1c), (w2c, b2c), (w3c, b3c), (w4c, b4c) = raw["critic"]
    (w1a, b1a), (w2a, b2a), (w3a, b3a), (w4a, b4a) = raw["actor"]
    num_outputs = raw["log_std"].shape[1]
    val_off, mu_off, std_off, slab = _slab_layout(num_outputs)
    hidden = w1c.shape[1]

    # Layer 1: concatenate [critic | actor] along the output axis.
    w1 = jnp.concatenate([w1c, w1a], axis=1)                 # [in, 2*hidden]
    b1 = jnp.concatenate([b1c, b1a], axis=1)                 # [1, 2*hidden]

    # Layer 2: block-diagonal -> one matmul on intact h1.
    w2 = jnp.zeros((2 * hidden, 512), jnp.float32)
    w2 = w2.at[:hidden, :256].set(w2c)
    w2 = w2.at[hidden:, 256:].set(w2a)
    b2 = jnp.concatenate([b2c, b2a], axis=1)                 # [1, 512]

    # Layer 4: lane-padded slab columns; padded/std columns are zero so no
    # garbage leaks; exp(log_std) is the bias of the (all-zero-weight) std lanes.
    w4c_pad = jnp.zeros((256, slab), jnp.float32)
    w4c_pad = w4c_pad.at[:, val_off:val_off + 1].set(w4c)
    w4a_pad = jnp.zeros((256, slab), jnp.float32)
    w4a_pad = w4a_pad.at[:, mu_off:mu_off + num_outputs].set(w4a)
    b4 = jnp.zeros((1, slab), jnp.float32)
    b4 = b4.at[:, val_off:val_off + 1].set(b4c)
    b4 = b4.at[:, mu_off:mu_off + num_outputs].set(b4a)
    b4 = b4.at[:, std_off:std_off + num_outputs].set(
        jnp.exp(raw["log_std"].astype(jnp.float32)))

    bf = lambda a: a.astype(jnp.bfloat16)
    return {
        "w1": bf(w1), "b1": b1,
        "w2": bf(w2), "b2": b2,
        "w3c": bf(w3c), "b3c": b3c, "w3a": bf(w3a), "b3a": b3a,
        "w4c": bf(w4c_pad), "w4a": bf(w4a_pad), "b4": b4,
        # Kept for shape metadata only (not a kernel input).
        "log_std": raw["log_std"],
    }


def _reference_forward(raw, x):
    """Pure-JAX f32 reference mirroring the PyTorch module."""
    def mlp(layers, h):
        for i, (w, b) in enumerate(layers):
            h = h @ w + b
            if i < len(layers) - 1:
                h = jnp.maximum(h, 0.0)
        return h
    value = mlp(raw["critic"], x)
    mu = mlp(raw["actor"], x)
    std = jnp.broadcast_to(jnp.exp(raw["log_std"]), mu.shape)
    return (mu, std), value


def _check(raw, packed, x):
    fwd = jax.jit(actor_critic_forward)
    (mu, std), value = fwd(packed, x)
    jax.block_until_ready((mu, std, value))

    batch = x.shape[0]
    num_outputs = raw["log_std"].shape[1]
    assert mu.shape == (batch, num_outputs)
    assert std.shape == (batch, num_outputs)
    assert value.shape == (batch, 1)

    # bf16 MXU inputs with f32 accumulation -> compare with relaxed tolerance.
    (mu_r, std_r), value_r = _reference_forward(raw, x)
    assert bool(jnp.allclose(mu, mu_r, atol=0.15, rtol=0.15))
    assert bool(jnp.allclose(value, value_r, atol=0.15, rtol=0.15))
    assert bool(jnp.allclose(std, std_r, atol=1e-3, rtol=1e-3))


if __name__ == "__main__":
    num_inputs, num_outputs, hidden_size = 32, 8, 32

    key = jax.random.PRNGKey(0)
    k_params, k_x1, k_x2 = jax.random.split(key, 3)
    raw = init_actor_critic_params(k_params, num_inputs, num_outputs,
                                   hidden_size, std=0.0)
    packed = pack_params(raw)

    # Small batch: single-tile path.
    x_small = jax.random.normal(k_x1, (8, num_inputs), dtype=jnp.float32)
    _check(raw, packed, x_small)

    # Larger batch: exercises multi-step grid (>=2 tiles) + batch padding.
    x_big = jax.random.normal(k_x2, (600, num_inputs), dtype=jnp.float32)
    _check(raw, packed, x_big)

    print("KERNEL_OK")
</pallas_src>

<mosaic_0001>
module attributes {stable_mosaic.version = 11 : i64} {
  func.func @_fused_actor_critic_kernel(%arg0: i32, %arg1: memref<8x32xf32, #tpu.memory_space<vmem>>, %arg2: memref<32x64xbf16, #tpu.memory_space<vmem>>, %arg3: memref<1x64xf32, #tpu.memory_space<vmem>>, %arg4: memref<64x512xbf16, #tpu.memory_space<vmem>>, %arg5: memref<1x512xf32, #tpu.memory_space<vmem>>, %arg6: memref<256x256xbf16, #tpu.memory_space<vmem>>, %arg7: memref<1x256xf32, #tpu.memory_space<vmem>>, %arg8: memref<256x256xbf16, #tpu.memory_space<vmem>>, %arg9: memref<1x256xf32, #tpu.memory_space<vmem>>, %arg10: memref<256x128xbf16, #tpu.memory_space<vmem>>, %arg11: memref<256x128xbf16, #tpu.memory_space<vmem>>, %arg12: memref<1x128xf32, #tpu.memory_space<vmem>>, %arg13: memref<8x128xf32, #tpu.memory_space<vmem>>) attributes {dimension_semantics = [#tpu.dimension_semantics<parallel>], iteration_bounds = array<i64: 1>, scalar_prefetch = 0 : i64, scratch_operands = 0 : i64, tpu.core_type = #tpu.core_type<tc>, window_params = [{transform_indices = @transform_0, window_bounds = array<i64: 8, 32>}, {pipeline_mode = #tpu.pipeline_mode<synchronous>, transform_indices = @transform_1, window_bounds = array<i64: 32, 64>}, {pipeline_mode = #tpu.pipeline_mode<synchronous>, transform_indices = @transform_2, window_bounds = array<i64: 1, 64>}, {pipeline_mode = #tpu.pipeline_mode<synchronous>, transform_indices = @transform_3, window_bounds = array<i64: 64, 512>}, {pipeline_mode = #tpu.pipeline_mode<synchronous>, transform_indices = @transform_4, window_bounds = array<i64: 1, 512>}, {pipeline_mode = #tpu.pipeline_mode<synchronous>, transform_indices = @transform_5, window_bounds = array<i64: 256, 256>}, {pipeline_mode = #tpu.pipeline_mode<synchronous>, transform_indices = @transform_6, window_bounds = array<i64: 1, 256>}, {pipeline_mode = #tpu.pipeline_mode<synchronous>, transform_indices = @transform_7, window_bounds = array<i64: 256, 256>}, {pipeline_mode = #tpu.pipeline_mode<synchronous>, transform_indices = @transform_8, window_bounds = array<i64: 1, 256>}, {pipeline_mode = #tpu.pipeline_mode<synchronous>, transform_indices = @transform_9, window_bounds = array<i64: 256, 128>}, {pipeline_mode = #tpu.pipeline_mode<synchronous>, transform_indices = @transform_10, window_bounds = array<i64: 256, 128>}, {pipeline_mode = #tpu.pipeline_mode<synchronous>, transform_indices = @transform_11, window_bounds = array<i64: 1, 128>}, {transform_indices = @transform_12, window_bounds = array<i64: 8, 128>}]} {
    %c0 = arith.constant 0 : index
    %c0_0 = arith.constant 0 : index
    %0 = vector.load %arg1[%c0, %c0_0] : memref<8x32xf32, #tpu.memory_space<vmem>>, vector<8x32xf32>
    %1 = arith.truncf %0 : vector<8x32xf32> to vector<8x32xbf16>
    %c0_1 = arith.constant 0 : index
    %c0_2 = arith.constant 0 : index
    %2 = vector.load %arg2[%c0_1, %c0_2] : memref<32x64xbf16, #tpu.memory_space<vmem>>, vector<32x64xbf16>
    %cst = arith.constant dense<0.000000e+00> : vector<8x64xf32>
    %3 = tpu.matmul %1, %2, %cst {dimension_numbers = #tpu.dot_dimension_numbers<[1], [0], [0], [1], [0, 0, 1, 1], [], []>} : vector<8x32xbf16>, vector<32x64xbf16>, vector<8x64xf32> -> vector<8x64xf32>
    %c0_3 = arith.constant 0 : index
    %c0_4 = arith.constant 0 : index
    %4 = vector.load %arg3[%c0_3, %c0_4] : memref<1x64xf32, #tpu.memory_space<vmem>>, vector<1x64xf32>
    %5 = vector.broadcast %4 : vector<1x64xf32> to vector<8x64xf32>
    %6 = arith.addf %3, %5 : vector<8x64xf32>
    %cst_5 = arith.constant 0.000000e+00 : f32
    %7 = vector.broadcast %cst_5 : f32 to vector<8x64xf32>
    %8 = arith.maximumf %6, %7 : vector<8x64xf32>
    %9 = arith.truncf %8 : vector<8x64xf32> to vector<8x64xbf16>
    %c0_6 = arith.constant 0 : index
    %c0_7 = arith.constant 0 : index
    %10 = vector.load %arg4[%c0_6, %c0_7] : memref<64x512xbf16, #tpu.memory_space<vmem>>, vector<64x512xbf16>
    %cst_8 = arith.constant dense<0.000000e+00> : vector<8x512xf32>
    %11 = tpu.matmul %9, %10, %cst_8 {dimension_numbers = #tpu.dot_dimension_numbers<[1], [0], [0], [1], [0, 0, 1, 1], [], []>} : vector<8x64xbf16>, vector<64x512xbf16>, vector<8x512xf32> -> vector<8x512xf32>
    %c0_9 = arith.constant 0 : index
    %c0_10 = arith.constant 0 : index
    %12 = vector.load %arg5[%c0_9, %c0_10] : memref<1x512xf32, #tpu.memory_space<vmem>>, vector<1x512xf32>
    %13 = vector.broadcast %12 : vector<1x512xf32> to vector<8x512xf32>
    %14 = arith.addf %11, %13 : vector<8x512xf32>
    %cst_11 = arith.constant 0.000000e+00 : f32
    %15 = vector.broadcast %cst_11 : f32 to vector<8x512xf32>
    %16 = arith.maximumf %14, %15 : vector<8x512xf32>
    %17 = vector.extract_strided_slice %16 {offsets = [0, 0], sizes = [8, 256], strides = [1, 1]} : vector<8x512xf32> to vector<8x256xf32>
    %18 = arith.truncf %17 : vector<8x256xf32> to vector<8x256xbf16>
    %19 = vector.extract_strided_slice %16 {offsets = [0, 256], sizes = [8, 256], strides = [1, 1]} : vector<8x512xf32> to vector<8x256xf32>
    %20 = arith.truncf %19 : vector<8x256xf32> to vector<8x256xbf16>
    %c0_12 = arith.constant 0 : index
    %c0_13 = arith.constant 0 : index
    %21 = vector.load %arg6[%c0_12, %c0_13] : memref<256x256xbf16, #tpu.memory_space<vmem>>, vector<256x256xbf16>
    %cst_14 = arith.constant dense<0.000000e+00> : vector<8x256xf32>
    %22 = tpu.matmul %18, %21, %cst_14 {dimension_numbers = #tpu.dot_dimension_numbers<[1], [0], [0], [1], [0, 0, 1, 1], [], []>} : vector<8x256xbf16>, vector<256x256xbf16>, vector<8x256xf32> -> vector<8x256xf32>
    %c0_15 = arith.constant 0 : index
    %c0_16 = arith.constant 0 : index
    %23 = vector.load %arg7[%c0_15, %c0_16] : memref<1x256xf32, #tpu.memory_space<vmem>>, vector<1x256xf32>
    %24 = vector.broadcast %23 : vector<1x256xf32> to vector<8x256xf32>
    %25 = arith.addf %22, %24 : vector<8x256xf32>
    %cst_17 = arith.constant 0.000000e+00 : f32
    %26 = vector.broadcast %cst_17 : f32 to vector<8x256xf32>
    %27 = arith.maximumf %25, %26 : vector<8x256xf32>
    %c0_18 = arith.constant 0 : index
    %c0_19 = arith.constant 0 : index
    %28 = vector.load %arg8[%c0_18, %c0_19] : memref<256x256xbf16, #tpu.memory_space<vmem>>, vector<256x256xbf16>
    %cst_20 = arith.constant dense<0.000000e+00> : vector<8x256xf32>
    %29 = tpu.matmul %20, %28, %cst_20 {dimension_numbers = #tpu.dot_dimension_numbers<[1], [0], [0], [1], [0, 0, 1, 1], [], []>} : vector<8x256xbf16>, vector<256x256xbf16>, vector<8x256xf32> -> vector<8x256xf32>
    %c0_21 = arith.constant 0 : index
    %c0_22 = arith.constant 0 : index
    %30 = vector.load %arg9[%c0_21, %c0_22] : memref<1x256xf32, #tpu.memory_space<vmem>>, vector<1x256xf32>
    %31 = vector.broadcast %30 : vector<1x256xf32> to vector<8x256xf32>
    %32 = arith.addf %29, %31 : vector<8x256xf32>
    %cst_23 = arith.constant 0.000000e+00 : f32
    %33 = vector.broadcast %cst_23 : f32 to vector<8x256xf32>
    %34 = arith.maximumf %32, %33 : vector<8x256xf32>
    %35 = arith.truncf %27 : vector<8x256xf32> to vector<8x256xbf16>
    %c0_24 = arith.constant 0 : index
    %c0_25 = arith.constant 0 : index
    %36 = vector.load %arg10[%c0_24, %c0_25] : memref<256x128xbf16, #tpu.memory_space<vmem>>, vector<256x128xbf16>
    %cst_26 = arith.constant dense<0.000000e+00> : vector<8x128xf32>
    %37 = tpu.matmul %35, %36, %cst_26 {dimension_numbers = #tpu.dot_dimension_numbers<[1], [0], [0], [1], [0, 0, 1, 1], [], []>} : vector<8x256xbf16>, vector<256x128xbf16>, vector<8x128xf32> -> vector<8x128xf32>
    %38 = arith.truncf %34 : vector<8x256xf32> to vector<8x256xbf16>
    %c0_27 = arith.constant 0 : index
    %c0_28 = arith.constant 0 : index
    %39 = vector.load %arg11[%c0_27, %c0_28] : memref<256x128xbf16, #tpu.memory_space<vmem>>, vector<256x128xbf16>
    %cst_29 = arith.constant dense<0.000000e+00> : vector<8x128xf32>
    %40 = tpu.matmul %38, %39, %cst_29 {dimension_numbers = #tpu.dot_dimension_numbers<[1], [0], [0], [1], [0, 0, 1, 1], [], []>} : vector<8x256xbf16>, vector<256x128xbf16>, vector<8x128xf32> -> vector<8x128xf32>
    %41 = arith.addf %37, %40 : vector<8x128xf32>
    %c0_30 = arith.constant 0 : index
    %c0_31 = arith.constant 0 : index
    %42 = vector.load %arg12[%c0_30, %c0_31] : memref<1x128xf32, #tpu.memory_space<vmem>>, vector<1x128xf32>
    %43 = vector.broadcast %42 : vector<1x128xf32> to vector<8x128xf32>
    %44 = arith.addf %41, %43 : vector<8x128xf32>
    %c0_32 = arith.constant 0 : index
    %c0_33 = arith.constant 0 : index
    %45 = vector.load %arg13[%c0_32, %c0_33] : memref<8x128xf32, #tpu.memory_space<vmem>>, vector<8x128xf32>
    tpu.vector_store %arg13[%c0_32, %c0_33], %44 {strides = array<i32>} : memref<8x128xf32, #tpu.memory_space<vmem>>, vector<8x128xf32>,
    return
  }
  func.func @transform_0(%arg0: i32) -> (i32, i32) {
    %c0_i32 = arith.constant 0 : i32
    %c0_i32_0 = arith.constant 0 : i32
    return %arg0, %c0_i32 : i32, i32
  }
  func.func @transform_1(%arg0: i32) -> (i32, i32) {
    %c0_i32 = arith.constant 0 : i32
    %c0_i32_0 = arith.constant 0 : i32
    %c0_i32_1 = arith.constant 0 : i32
    return %c0_i32, %c0_i32_0 : i32, i32
  }
  func.func @transform_2(%arg0: i32) -> (i32, i32) {
    %c0_i32 = arith.constant 0 : i32
    %c0_i32_0 = arith.constant 0 : i32
    %c0_i32_1 = arith.constant 0 : i32
    return %c0_i32, %c0_i32_0 : i32, i32
  }
  func.func @transform_3(%arg0: i32) -> (i32, i32) {
    %c0_i32 = arith.constant 0 : i32
    %c0_i32_0 = arith.constant 0 : i32
    %c0_i32_1 = arith.constant 0 : i32
    return %c0_i32, %c0_i32_0 : i32, i32
  }
  func.func @transform_4(%arg0: i32) -> (i32, i32) {
    %c0_i32 = arith.constant 0 : i32
    %c0_i32_0 = arith.constant 0 : i32
    %c0_i32_1 = arith.constant 0 : i32
    return %c0_i32, %c0_i32_0 : i32, i32
  }
  func.func @transform_5(%arg0: i32) -> (i32, i32) {
    %c0_i32 = arith.constant 0 : i32
    %c0_i32_0 = arith.constant 0 : i32
    %c0_i32_1 = arith.constant 0 : i32
    return %c0_i32, %c0_i32_0 : i32, i32
  }
  func.func @transform_6(%arg0: i32) -> (i32, i32) {
    %c0_i32 = arith.constant 0 : i32
    %c0_i32_0 = arith.constant 0 : i32
    %c0_i32_1 = arith.constant 0 : i32
    return %c0_i32, %c0_i32_0 : i32, i32
  }
  func.func @transform_7(%arg0: i32) -> (i32, i32) {
    %c0_i32 = arith.constant 0 : i32
    %c0_i32_0 = arith.constant 0 : i32
    %c0_i32_1 = arith.constant 0 : i32
    return %c0_i32, %c0_i32_0 : i32, i32
  }
  func.func @transform_8(%arg0: i32) -> (i32, i32) {
    %c0_i32 = arith.constant 0 : i32
    %c0_i32_0 = arith.constant 0 : i32
    %c0_i32_1 = arith.constant 0 : i32
    return %c0_i32, %c0_i32_0 : i32, i32
  }
  func.func @transform_9(%arg0: i32) -> (i32, i32) {
    %c0_i32 = arith.constant 0 : i32
    %c0_i32_0 = arith.constant 0 : i32
    %c0_i32_1 = arith.constant 0 : i32
    return %c0_i32, %c0_i32_0 : i32, i32
  }
  func.func @transform_10(%arg0: i32) -> (i32, i32) {
    %c0_i32 = arith.constant 0 : i32
    %c0_i32_0 = arith.constant 0 : i32
    %c0_i32_1 = arith.constant 0 : i32
    return %c0_i32, %c0_i32_0 : i32, i32
  }
  func.func @transform_11(%arg0: i32) -> (i32, i32) {
    %c0_i32 = arith.constant 0 : i32
    %c0_i32_0 = arith.constant 0 : i32
    %c0_i32_1 = arith.constant 0 : i32
    return %c0_i32, %c0_i32_0 : i32, i32
  }
  func.func @transform_12(%arg0: i32) -> (i32, i32) {
    %c0_i32 = arith.constant 0 : i32
    %c0_i32_0 = arith.constant 0 : i32
    return %arg0, %c0_i32 : i32, i32
  }
}

</mosaic_0001>

<bundles_post_ra>
// kernel: actor_critic_forward.1
= control target key start
LH: loop header
LB: loop body
LE: loop exit
PB: predicated region body
PF: predicated region fallthrough
CT: control target
= control target key end

     0   :  { %17 = vsyncpa [#allocation3], 0  ;;  %s1931_s0 = inlined_call_operand.hbm [shape: f32[8,32], index: 0, kind: input, shape index: {}]   ;;  %s1932_s1 = inlined_call_operand.vmem [shape: bf16[32,64], index: 1, kind: input, shape index: {}]   ;;  %s1933_s2 = inlined_call_operand.vmem [shape: f32[1,64], index: 2, kind: input, shape index: {}]   ;;  %s1934_s3 = inlined_call_operand.hbm [shape: bf16[64,512], index: 3, kind: input, shape index: {}]   ;;  %s1935_s4 = inlined_call_operand.vmem [shape: f32[1,512], index: 4, kind: input, shape index: {}]   ;;  %s1936_s5 = inlined_call_operand.hbm [shape: bf16[256,256], index: 5, kind: input, shape index: {}]   ;;  %s1937_s6 = inlined_call_operand.vmem [shape: f32[1,256], index: 6, kind: input, shape index: {}]   ;;  %s1938_s7 = inlined_call_operand.hbm [shape: bf16[256,256], index: 7, kind: input, shape index: {}]   ;;  %s1939_s8 = inlined_call_operand.vmem [shape: f32[1,256], index: 8, kind: input, shape index: {}]   ;;  %s1940_s9 = inlined_call_operand.hbm [shape: bf16[256,128], index: 9, kind: input, shape index: {}]   ;;  %s1941_s10 = inlined_call_operand.hbm [shape: bf16[256,128], index: 10, kind: input, shape index: {}]   ;;  %s1942_s11 = inlined_call_operand.vmem [shape: f32[1,128], index: 11, kind: input, shape index: {}]   ;;  %s1943_s12 = inlined_call_operand.vmem [shape: f32[8,128], index: 12, kind: output, shape index: {}]  }
   0x1   :  { %18 = vsyncpa [#allocation5], 0 }
   0x2   :  { %19 = vsyncpa [#allocation8], 0 }
   0x3   :  { %20 = vsyncpa [#allocation11], 0  ;;  %s1739_s21 = smov [#allocation4]   ;;  %s1599_s25 = scalar_lea.hbm %s1934_s3, 2048 }
   0x4   :  { %s40_s22 = sshll.u32 %s1739_s21, 4  ;;  %p1600_p0 = scmp.ne.s32.totalorder %s1934_s3, %s1599_s25  ;;  %s41_s22 = int_to_ptr.vmem [resolvable:$true] %s40_s22 }
   0x5   :  { %p1603_p1 = scmp.lt.u32.totalorder %s1599_s25, %s1934_s3 }
   0x7   :  { %p1605_p2 = pnand %p1603_p1, %p1600_p0 }
   0x9   :  { %1608 = shalt.err (!%p1605_p2)
}
   0xa   :  { %s1609_s30 = scalar_lea.vmem %s41_s22, 2048  ;;  %p1614_p4 = scmp.lt.s32.totalorder %s41_s22, %s41_s22 }
   0xb   :  { %p1610_p3 = scmp.ne.s32.totalorder %s41_s22, %s1609_s30  ;;  %p1615_p5 = scmp.lt.s32.totalorder %s1609_s30, %s1609_s30 }
   0xd   :  { %p1616_p6 = por %p1615_p5, %p1614_p4 }
   0xf   :  { %p1617_p7 = pnand %p1616_p6, %p1610_p3 }
  0x11   :  { %1620 = shalt.err (!%p1617_p7)
}
  0x12   :  { %s1740_s13 = smov 256   ;;  %s1741_s14 = smov 16  }
  0x13   :  { %46 = dma.hbm_to_vmem [thread:$0]  %s1934_s3, 2048, %s41_s22, [#allocation5], %s1740_s13, %s1740_s13, %s1741_s14  }
  0x14   :  { %s1742_s17 = smov [#allocation7]   ;;  %s1743_s19 = smov [#allocation2]  }
  0x15   :  { %s68_s18 = sshll.u32 %s1742_s17, 4  ;;  %s27_s20 = sshll.u32 %s1743_s19, 4  ;;  %s69_s18 = int_to_ptr.vmem [resolvable:$true] %s68_s18  ;;  %s28_s20 = int_to_ptr.vmem [resolvable:$true] %s27_s20 }
  0x16   :  { %s1621_s24 = scalar_lea.hbm %s1938_s7, 4096 }
  0x17   :  { %p1622_p8 = scmp.ne.s32.totalorder %s1938_s7, %s1621_s24  ;;  %p1625_p9 = scmp.lt.u32.totalorder %s1621_s24, %s1938_s7 }
  0x19   :  { %p1627_p10 = pnand %p1625_p9, %p1622_p8 }
  0x1b   :  { %1630 = shalt.err (!%p1627_p10)
}
  0x1c   :  { %s1631_s3 = scalar_lea.vmem %s69_s18, 4096  ;;  %p1636_p12 = scmp.lt.s32.totalorder %s69_s18, %s69_s18 }
  0x1d   :  { %p1632_p11 = scmp.ne.s32.totalorder %s69_s18, %s1631_s3  ;;  %p1637_p13 = scmp.lt.s32.totalorder %s1631_s3, %s1631_s3 }
  0x1f   :  { %p1638_p0 = por %p1637_p13, %p1636_p12 }
  0x21   :  { %p1639_p1 = pnand %p1638_p0, %p1632_p11 }
  0x23   :  { %1642 = shalt.err (!%p1639_p1)
}
  0x24   :  { %s1744_s22 = smov 128   ;;  %s1745_s29 = smov 8  }
  0x25   :  { %74 = dma.hbm_to_vmem [thread:$0]  %s1938_s7, 4096, %s69_s18, [#allocation8], %s1744_s22, %s1744_s22, %s1745_s29  }
  0x26   :  { %s1643_s16 = scalar_lea.hbm %s1931_s0, 128 }
  0x27   :  { %p1644_p2 = scmp.ne.s32.totalorder %s1931_s0, %s1643_s16  ;;  %p1647_p3 = scmp.lt.u32.totalorder %s1643_s16, %s1931_s0 }
  0x29   :  { %p1649_p4 = pnand %p1647_p3, %p1644_p2 }
  0x2b   :  { %1652 = shalt.err (!%p1649_p4)
}
  0x2c   :  { %s1653_s24 = scalar_lea.vmem %s28_s20, 128  ;;  %p1658_p6 = scmp.lt.s32.totalorder %s28_s20, %s28_s20 }
  0x2d   :  { %p1654_p5 = scmp.ne.s32.totalorder %s28_s20, %s1653_s24  ;;  %p1659_p7 = scmp.lt.s32.totalorder %s1653_s24, %s1653_s24 }
  0x2f   :  { %p1660_p8 = por %p1659_p7, %p1658_p6 }
  0x31   :  { %p1661_p9 = pnand %p1660_p8, %p1654_p5 }
  0x33   :  { %1664 = shalt.err (!%p1661_p9)
}
  0x34   :  { %30 = dma.hbm_to_vmem [thread:$0]  %s1931_s0, 128, %s28_s20, [#allocation3]  }
  0x35   :  { %s1746_s25 = smov [#allocation6]   ;;  %s1747_s27 = smov [#allocation9]  }
  0x36   :  { %s54_s26 = sshll.u32 %s1746_s25, 4  ;;  %s82_s28 = sshll.u32 %s1747_s27, 4  ;;  %s55_s26 = int_to_ptr.vmem [resolvable:$true] %s54_s26  ;;  %s83_s28 = int_to_ptr.vmem [resolvable:$true] %s82_s28 }
  0x37   :  { %s1665_s13 = scalar_lea.hbm %s1936_s5, 4096 }
  0x38   :  { %p1666_p10 = scmp.ne.s32.totalorder %s1936_s5, %s1665_s13  ;;  %p1669_p11 = scmp.lt.u32.totalorder %s1665_s13, %s1936_s5 }
  0x3a   :  { %p1671_p12 = pnand %p1669_p11, %p1666_p10 }
  0x3c   :  { %1674 = shalt.err (!%p1671_p12)
}
  0x3d   :  { %s1675_s0 = scalar_lea.vmem %s55_s26, 4096  ;;  %p1680_p0 = scmp.lt.s32.totalorder %s55_s26, %s55_s26 }
  0x3e   :  { %p1676_p13 = scmp.ne.s32.totalorder %s55_s26, %s1675_s0  ;;  %p1681_p1 = scmp.lt.s32.totalorder %s1675_s0, %s1675_s0 }
  0x40   :  { %p1682_p2 = por %p1681_p1, %p1680_p0 }
  0x42   :  { %p1683_p3 = pnand %p1682_p2, %p1676_p13 }
  0x44   :  { %1686 = shalt.err (!%p1683_p3)
}
  0x45   :  { %60 = dma.hbm_to_vmem [thread:$0]  %s1936_s5, 4096, %s55_s26, [#allocation5], %s1744_s22, %s1744_s22, %s1745_s29  }
  0x46   :  { %s1687_s24 = scalar_lea.hbm %s1940_s9, 2048 }
  0x47   :  { %p1688_p4 = scmp.ne.s32.totalorder %s1940_s9, %s1687_s24  ;;  %p1691_p5 = scmp.lt.u32.totalorder %s1687_s24, %s1940_s9 }
  0x49   :  { %p1693_p6 = pnand %p1691_p5, %p1688_p4 }
  0x4b   :  { %1696 = shalt.err (!%p1693_p6)
}
  0x4c   :  { %s1697_s3 = scalar_lea.vmem %s83_s28, 2048  ;;  %p1702_p8 = scmp.lt.s32.totalorder %s83_s28, %s83_s28 }
  0x4d   :  { %p1698_p7 = scmp.ne.s32.totalorder %s83_s28, %s1697_s3  ;;  %p1703_p9 = scmp.lt.s32.totalorder %s1697_s3, %s1697_s3 }
  0x4f   :  { %p1704_p10 = por %p1703_p9, %p1702_p8 }
  0x51   :  { %p1705_p11 = pnand %p1704_p10, %p1698_p7 }
  0x53   :  { %1708 = shalt.err (!%p1705_p11)
}
  0x54   :  { %s1748_s5 = smov 64   ;;  %s1749_s22 = smov 4  }
  0x55   :  { %88 = dma.hbm_to_vmem [thread:$0]  %s1940_s9, 2048, %s83_s28, [#allocation8], %s1748_s5, %s1748_s5, %s1749_s22  }
  0x56   :  { %s1750_s30 = smov [#allocation10]   ;;  %s1709_s16 = scalar_lea.hbm %s1941_s10, 2048 }
  0x57   :  { %s94_s13 = sshll.u32 %s1750_s30, 4  ;;  %p1710_p12 = scmp.ne.s32.totalorder %s1941_s10, %s1709_s16  ;;  %s95_s13 = int_to_ptr.vmem [resolvable:$true] %s94_s13 }
  0x58   :  { %p1713_p13 = scmp.lt.u32.totalorder %s1709_s16, %s1941_s10 }
  0x5a   :  { %p1715_p0 = pnand %p1713_p13, %p1710_p12 }
  0x5c   :  { %1718 = shalt.err (!%p1715_p0)
}
  0x5d   :  { %s1719_s21 = scalar_lea.vmem %s95_s13, 2048  ;;  %p1724_p2 = scmp.lt.s32.totalorder %s95_s13, %s95_s13 }
  0x5e   :  { %p1720_p1 = scmp.ne.s32.totalorder %s95_s13, %s1719_s21  ;;  %p1725_p3 = scmp.lt.s32.totalorder %s1719_s21, %s1719_s21 }
  0x60   :  { %p1726_p4 = por %p1725_p3, %p1724_p2 }
  0x62   :  { %p1727_p5 = pnand %p1726_p4, %p1720_p1 }
  0x64   :  { %1730 = shalt.err (!%p1727_p5)
}
  0x65   :  { %100 = dma.hbm_to_vmem [thread:$0]  %s1941_s10, 2048, %s95_s13, [#allocation11], %s1748_s5, %s1748_s5, %s1749_s22  }
  0x66   :  { %1731 = dma.done.wait [#allocation3], 128  }
  0x67   :  { %1732 = vsyncadd [#allocation3], 4294967168 }
  0x68   :  { %1733 = dma.done.wait [#allocation5], 6144  }
  0x69   :  { %1734 = vsyncadd [#allocation5], 4294961152 }
  0x6a   :  { %1735 = dma.done.wait [#allocation8], 6144  }
  0x6b   :  { %1736 = vsyncadd [#allocation8], 4294961152 }
  0x6c   :  { %1737 = dma.done.wait [#allocation11], 2048  }
  0x6d   :  { %1738 = vsyncadd [#allocation11], 4294965248  ;;  %v1751_v0 = vmov 0.0   ;;  %vm1752_vm0 = vmmov 0   ;;  %v1445_v1 = vld [vmem:[%s1932_s1] sm:$0xff]   ;;  %v1446_v2 = vld [vmem:[%s1932_s1 + $0x8] sm:$0xff]  }
  0x6e   :  { %1422 = vmatprep.subr.bf16.mxu0 %v1751_v0  ;;  %1426 = vmatprep.mubr.msk.bf16.mxu0 %vm1752_vm0, %v1751_v0  ;;  %v122_v3 = vld [vmem:[#allocation2] sm:$0xff]  ;;  %v1447_v4 = vld [vmem:[#allocation4 + $0x4] ss:$16 sps:$4 sm:$0xff]   ;;  %v1452_v6 = vld [vmem:[#allocation4] ss:$16 sps:$4 sm:$0xff]   ;;  %vm147_vm1 = vcmask 261120  }
  0x6f   :  { %1423 = vmatpush3.bf16.msra.mxu0 %v1445_v1  ;;  %v1451_v5 = vld [vmem:[#allocation4 + $0xc] ss:$16 sps:$4 sm:$0xff]   ;;  %v123_v7 = vpack.c.bf16 %v122_v3, %v122_v3  ;;  %315 = vmatprep.subr.bf16.mxu1 %v1447_v4  ;;  %v1453_v8 = vld [vmem:[#allocation4 + $0x24] ss:$16 sps:$4 sm:$0xff]   ;;  %v1449_v9 = vld [vmem:[#allocation4 + $0x8] ss:$16 sps:$4 sm:$0xff]  }
  0x70   :  { %1424 = vmatprep.subr.bf16.mxu0 %v1751_v0  ;;  %316 = vmatpush1.bf16.msra.mxu1 %v1452_v6  ;;  %v1457_v10 = vld [vmem:[#allocation4 + $0x2c] ss:$16 sps:$4 sm:$0xff]   ;;  %v1458_v11 = vld [vmem:[#allocation4 + $0x20] ss:$16 sps:$4 sm:$0xff]   ;;  %v1459_v12 = vld [vmem:[#allocation4 + $0x44] ss:$16 sps:$4 sm:$0xff]  }
  0x71   :  { %317 = vmatprep.subr.bf16.mxu1 %v1453_v8  ;;  %v1455_v13 = vld [vmem:[#allocation4 + $0x28] ss:$16 sps:$4 sm:$0xff]   ;;  %v1463_v14 = vld [vmem:[#allocation4 + $0x4c] ss:$16 sps:$4 sm:$0xff]   ;;  %v1464_v16 = vld [vmem:[#allocation4 + $0x40] ss:$16 sps:$4 sm:$0xff]  }
  0x72   :  { %v1461_v15 = vld [vmem:[#allocation4 + $0x48] ss:$16 sps:$4 sm:$0xff]   ;;  %v1465_v17 = vld [vmem:[#allocation4 + $0x64] ss:$16 sps:$4 sm:$0xff]   ;;  %v1469_v18 = vld [vmem:[#allocation4 + $0x6c] ss:$16 sps:$4 sm:$0xff]  }
  0x73   :  { %1425 = vmatpush3.bf16.msra.mxu0 %v1446_v2  ;;  %v1467_v19 = vld [vmem:[#allocation4 + $0x68] ss:$16 sps:$4 sm:$0xff]   ;;  %v1470_v20 = vld [vmem:[#allocation4 + $0x60] ss:$16 sps:$4 sm:$0xff]   ;;  %v1753_v21 = vmov 0   ;;  %vm311_vm2 = vcmask 523264  }
  0x74   :  { %356 = vmatprep.subr.bf16.mxu0 %v1451_v5  ;;  %318 = vmatpush1.bf16.msra.mxu1 %v1458_v11  ;;  %v1473_v22 = vld [vmem:[#allocation6 + $0x4] ss:$8 sps:$4 sm:$0xff]   ;;  %v1256_v24 = vld [vmem:[%s1933_s2] ss:$0 sm:$0xff]  ;;  %v1479_v34 = vld [vmem:[#allocation6 + $0x14] ss:$8 sps:$4 sm:$0xff]  }
  0x75   :  { %319 = vmatprep.subr.bf16.mxu1 %v1459_v12  ;;  %347 = vmatprep.mubr.bf16.mxu1 %v1753_v21  ;;  %v1476_v23 = vld [vmem:[#allocation7 + $0x4] ss:$8 sps:$4 sm:$0xff]   ;;  %v1471_v31 = vld [vmem:[#allocation6] ss:$8 sps:$4 sm:$0xff]   ;;  %v1482_v35 = vld [vmem:[#allocation7 + $0x14] ss:$8 sps:$4 sm:$0xff]  }
  0x76   :  { %1427 = vmatmul.mubr.msk.bf16.vlgmr.msra.gmra.mrb[0].mxu0 %vm147_vm1, %v123_v7  ;;  %v1474_v32 = vld [vmem:[#allocation7] ss:$8 sps:$4 sm:$0xff]   ;;  %v1477_v36 = vld [vmem:[#allocation6 + $0x10] ss:$8 sps:$4 sm:$0xff]   ;;  %v1485_v38 = vld [vmem:[#allocation6 + $0x24] ss:$8 sps:$4 sm:$0xff]  }
  0x77   :  { %357 = vmatpush1.bf16.msra.mxu0 %v1449_v9  ;;  %388 = vmatprep.mubr.bf16.mxu0 %v1753_v21  ;;  %v1480_v37 = vld [vmem:[#allocation7 + $0x10] ss:$8 sps:$4 sm:$0xff]   ;;  %v1488_v39 = vld [vmem:[#allocation7 + $0x24] ss:$8 sps:$4 sm:$0xff]   ;;  %v1483_v40 = vld [vmem:[#allocation6 + $0x20] ss:$8 sps:$4 sm:$0xff]  }
  0x78   :  { %358 = vmatprep.subr.bf16.mxu0 %v1457_v10  ;;  %320 = vmatpush1.bf16.msra.mxu1 %v1464_v16  ;;  %v1486_v41 = vld [vmem:[#allocation7 + $0x20] ss:$8 sps:$4 sm:$0xff]   ;;  %v1491_v42 = vld [vmem:[#allocation6 + $0x34] ss:$8 sps:$4 sm:$0xff]   ;;  %v1489_v44 = vld [vmem:[#allocation6 + $0x30] ss:$8 sps:$4 sm:$0xff]  }
  0x79   :  { %321 = vmatprep.subr.bf16.mxu1 %v1465_v17  ;;  %v1494_v43 = vld [vmem:[#allocation7 + $0x34] ss:$8 sps:$4 sm:$0xff]   ;;  %v1492_v45 = vld [vmem:[#allocation7 + $0x30] ss:$8 sps:$4 sm:$0xff]   ;;  %v1497_v46 = vld [vmem:[#allocation6 + $0x44] ss:$8 sps:$4 sm:$0xff]  }
  0x7a   :  { %v1500_v47 = vld [vmem:[#allocation7 + $0x44] ss:$8 sps:$4 sm:$0xff]   ;;  %v1495_v48 = vld [vmem:[#allocation6 + $0x40] ss:$8 sps:$4 sm:$0xff]   ;;  %v1503_v50 = vld [vmem:[#allocation6 + $0x54] ss:$8 sps:$4 sm:$0xff]  }
  0x7b   :  { %359 = vmatpush1.bf16.msra.mxu0 %v1455_v13  ;;  %v1498_v49 = vld [vmem:[#allocation7 + $0x40] ss:$8 sps:$4 sm:$0xff]   ;;  %v1506_v51 = vld [vmem:[#allocation7 + $0x54] ss:$8 sps:$4 sm:$0xff]   ;;  %v1501_v52 = vld [vmem:[#allocation6 + $0x50] ss:$8 sps:$4 sm:$0xff]  }
  0x7c   :  { %360 = vmatprep.subr.bf16.mxu0 %v1463_v14  ;;  %322 = vmatpush1.bf16.msra.mxu1 %v1470_v20  ;;  %v1504_v53 = vld [vmem:[#allocation7 + $0x50] ss:$8 sps:$4 sm:$0xff]   ;;  %v1509_v54 = vld [vmem:[#allocation6 + $0x64] ss:$8 sps:$4 sm:$0xff]   ;;  %v1507_v56 = vld [vmem:[#allocation6 + $0x60] ss:$8 sps:$4 sm:$0xff]  }
  0x7d   :  { %609 = vmatprep.subr.bf16.mxu1 %v1473_v22  ;;  %v1512_v55 = vld [vmem:[#allocation7 + $0x64] ss:$8 sps:$4 sm:$0xff]   ;;  %v1510_v57 = vld [vmem:[#allocation7 + $0x60] ss:$8 sps:$4 sm:$0xff]   ;;  %v1515_v58 = vld [vmem:[#allocation6 + $0x74] ss:$8 sps:$4 sm:$0xff]  }
  0x7e   :  { %v1518_v59 = vld [vmem:[#allocation7 + $0x74] ss:$8 sps:$4 sm:$0xff]   ;;  %v1513_v60 = vld [vmem:[#allocation6 + $0x70] ss:$8 sps:$4 sm:$0xff]   ;;  %v1521_v62 = vld [vmem:[#allocation6 + $0x84] ss:$8 sps:$4 sm:$0xff]  }
  0x7f   :  { %361 = vmatpush1.bf16.msra.mxu0 %v1461_v15  ;;  %v1516_v61 = vld [vmem:[#allocation7 + $0x70] ss:$8 sps:$4 sm:$0xff]   ;;  %v1524_v63 = vld [vmem:[#allocation7 + $0x84] ss:$8 sps:$4 sm:$0xff]   ;;  %v1519_v0 = vld [vmem:[#allocation6 + $0x80] ss:$8 sps:$4 sm:$0xff]  }
  0x80   :  { %362 = vmatprep.subr.bf16.mxu0 %v1469_v18  ;;  %v1522_v1 = vld [vmem:[#allocation7 + $0x80] ss:$8 sps:$4 sm:$0xff]   ;;  %v1527_v2 = vld [vmem:[#allocation6 + $0x94] ss:$8 sps:$4 sm:$0xff]   ;;  %v1525_v4 = vld [vmem:[#allocation6 + $0x90] ss:$8 sps:$4 sm:$0xff]  }
  0x81   :  { %v1530_v3 = vld [vmem:[#allocation7 + $0x94] ss:$8 sps:$4 sm:$0xff]   ;;  %v1528_v5 = vld [vmem:[#allocation7 + $0x90] ss:$8 sps:$4 sm:$0xff]   ;;  %v1533_v6 = vld [vmem:[#allocation6 + $0xa4] ss:$8 sps:$4 sm:$0xff]  }
  0x82   :  { %v1536_v7 = vld [vmem:[#allocation7 + $0xa4] ss:$8 sps:$4 sm:$0xff]   ;;  %v1531_v8 = vld [vmem:[#allocation6 + $0xa0] ss:$8 sps:$4 sm:$0xff]   ;;  %v1539_v10 = vld [vmem:[#allocation6 + $0xb4] ss:$8 sps:$4 sm:$0xff]  }
  0x83   :  { %363 = vmatpush1.bf16.msra.mxu0 %v1467_v19  ;;  %v1534_v9 = vld [vmem:[#allocation7 + $0xa0] ss:$8 sps:$4 sm:$0xff]   ;;  %v1542_v11 = vld [vmem:[#allocation7 + $0xb4] ss:$8 sps:$4 sm:$0xff]   ;;  %v1537_v12 = vld [vmem:[#allocation6 + $0xb0] ss:$8 sps:$4 sm:$0xff]  }
  0x84   :  { %856 = vmatprep.subr.bf16.mxu0 %v1476_v23  ;;  %v1540_v13 = vld [vmem:[#allocation7 + $0xb0] ss:$8 sps:$4 sm:$0xff]   ;;  %v1545_v14 = vld [vmem:[#allocation6 + $0xc4] ss:$8 sps:$4 sm:$0xff]   ;;  %v1543_v16 = vld [vmem:[#allocation6 + $0xc0] ss:$8 sps:$4 sm:$0xff]  }
  0x85   :  { %v1548_v15 = vld [vmem:[#allocation7 + $0xc4] ss:$8 sps:$4 sm:$0xff]   ;;  %v1546_v17 = vld [vmem:[#allocation7 + $0xc0] ss:$8 sps:$4 sm:$0xff]   ;;  %v1551_v18 = vld [vmem:[#allocation6 + $0xd4] ss:$8 sps:$4 sm:$0xff]  }
  0x86   :  { %v1554_v19 = vld [vmem:[#allocation7 + $0xd4] ss:$8 sps:$4 sm:$0xff]   ;;  %v1549_v20 = vld [vmem:[#allocation6 + $0xd0] ss:$8 sps:$4 sm:$0xff]   ;;  %v1557_v22 = vld [vmem:[#allocation6 + $0xe4] ss:$8 sps:$4 sm:$0xff]  }
  0x87   :  { %v1552_v21 = vld [vmem:[#allocation7 + $0xd0] ss:$8 sps:$4 sm:$0xff]   ;;  %v1560_v23 = vld [vmem:[#allocation7 + $0xe4] ss:$8 sps:$4 sm:$0xff]  }
 0x149   :  { %v185_v25 = vpop.f32.mrb[0].mxu0 }
 0x14a   :  { %v186_v26 = vadd.f32 %v1256_v24, %v185_v25  ;;  %v1428_v27 = vpop.f32.mrb[1].mxu0  ;;  %v1555_v24 = vld [vmem:[#allocation6 + $0xe0] ss:$8 sps:$4 sm:$0xff]  }
 0x14b   :  { %v188_v28 = vpop.f32.mrb[2].mxu0  ;;  %v1558_v25 = vld [vmem:[#allocation7 + $0xe0] ss:$8 sps:$4 sm:$0xff]   ;;  %v1566_v27 = vld [vmem:[#allocation7 + $0xf4] ss:$8 sps:$4 sm:$0xff]  }
 0x14c   :  { %v191_v29 = vmax.f32 %v186_v26, 0.0  ;;  %v1429_v30 = vpop.f32.mrb[3].mxu0  ;;  %v1563_v26 = vld [vmem:[#allocation6 + $0xf4] ss:$8 sps:$4 sm:$0xff]   ;;  %v1561_v28 = vld [vmem:[#allocation6 + $0xf0] ss:$8 sps:$4 sm:$0xff]  }
 0x14d   :  { %v1567_v30 = vld [vmem:[#allocation10 + $0x40] sm:$0xff]  }
 0x14e   :  { %v192_v33 = vpack.c.bf16 %v191_v29, %v191_v29  ;;  %v1564_v29 = vld [vmem:[#allocation7 + $0xf0] ss:$8 sps:$4 sm:$0xff]  }
 0x150   :  { %1276 = vmatmul.mubr.msk.bf16.vlgmr.msra.gmra.mrb[0].mxu1 %vm311_vm2, %v192_v33  ;;  %1277 = vmatmul.mubr.msk.bf16.vlgmr.msra.gmra.mrb[4].mxu0 %vm311_vm2, %v192_v33 }
 0x151   :  { %610 = vmatpush1.bf16.msra.mxu1 %v1471_v31  ;;  %857 = vmatpush1.bf16.msra.mxu0 %v1474_v32  ;;  %v1568_v31 = vld [vmem:[#allocation9 + $0x40] sm:$0xff]   ;;  %v211_v32 = vlaneseq }
 0x152   :  { %611 = vmatprep.subr.bf16.mxu1 %v1479_v34  ;;  %858 = vmatprep.subr.bf16.mxu0 %v1482_v35 }
 0x153   :  { %v212_v33 = vshrl.u32 %v211_v32, 7 }
 0x155   :  { %612 = vmatpush1.bf16.msra.mxu1 %v1477_v36  ;;  %859 = vmatpush1.bf16.msra.mxu0 %v1480_v37  ;;  %v1906_v34 = vsub.s32 0, %v212_v33  ;;  %v221_v35 = vsub.s32 2, %v212_v33  ;;  %v209_v36 = vld [vmem:[%s1935_s4] sm:$0xf]  ;;  %v1911_v37 = vsub.s32 1, %v212_v33 }
 0x156   :  { %613 = vmatprep.subr.bf16.mxu1 %v1485_v38  ;;  %860 = vmatprep.subr.bf16.mxu0 %v1488_v39  ;;  %v225_v38 = vsub.s32 3, %v212_v33 }
 0x157   :  { %v214_v39 = vrot.slane %v209_v36, %v1906_v34 }
 0x159   :  { %614 = vmatpush1.bf16.msra.mxu1 %v1483_v40  ;;  %861 = vmatpush1.bf16.msra.mxu0 %v1486_v41  ;;  %v222_v40 = vrot.slane %v209_v36, %v221_v35  ;;  %v218_v41 = vrot.slane %v209_v36, %v1911_v37 }
 0x15a   :  { %615 = vmatprep.subr.bf16.mxu1 %v1491_v42  ;;  %862 = vmatprep.subr.bf16.mxu0 %v1494_v43  ;;  %v226_v42 = vrot.slane %v209_v36, %v225_v38 }
 0x15d   :  { %616 = vmatpush1.bf16.msra.mxu1 %v1489_v44  ;;  %863 = vmatpush1.bf16.msra.mxu0 %v1492_v45 }
 0x15e   :  { %617 = vmatprep.subr.bf16.mxu1 %v1497_v46  ;;  %864 = vmatprep.subr.bf16.mxu0 %v1500_v47 }
 0x161   :  { %618 = vmatpush1.bf16.msra.mxu1 %v1495_v48  ;;  %865 = vmatpush1.bf16.msra.mxu0 %v1498_v49 }
 0x162   :  { %619 = vmatprep.subr.bf16.mxu1 %v1503_v50  ;;  %866 = vmatprep.subr.bf16.mxu0 %v1506_v51 }
 0x165   :  { %620 = vmatpush1.bf16.msra.mxu1 %v1501_v52  ;;  %867 = vmatpush1.bf16.msra.mxu0 %v1504_v53 }
 0x166   :  { %621 = vmatprep.subr.bf16.mxu1 %v1509_v54  ;;  %868 = vmatprep.subr.bf16.mxu0 %v1512_v55 }
 0x169   :  { %622 = vmatpush1.bf16.msra.mxu1 %v1507_v56  ;;  %869 = vmatpush1.bf16.msra.mxu0 %v1510_v57 }
 0x16a   :  { %623 = vmatprep.subr.bf16.mxu1 %v1515_v58  ;;  %870 = vmatprep.subr.bf16.mxu0 %v1518_v59 }
 0x16d   :  { %624 = vmatpush1.bf16.msra.mxu1 %v1513_v60  ;;  %871 = vmatpush1.bf16.msra.mxu0 %v1516_v61  ;;  %v1569_v61 = vld [vmem:[#allocation10] sm:$0xff]  }
 0x16e   :  { %625 = vmatprep.subr.bf16.mxu1 %v1521_v62  ;;  %872 = vmatprep.subr.bf16.mxu0 %v1524_v63  ;;  %v1570_v62 = vld [vmem:[#allocation9] sm:$0xff]  }
 0x171   :  { %626 = vmatpush1.bf16.msra.mxu1 %v1519_v0  ;;  %873 = vmatpush1.bf16.msra.mxu0 %v1522_v1  ;;  %v1571_v1 = vld [vmem:[#allocation10 + $0x48] sm:$0xff]  }
 0x172   :  { %627 = vmatprep.subr.bf16.mxu1 %v1527_v2  ;;  %874 = vmatprep.subr.bf16.mxu0 %v1530_v3  ;;  %v1572_v2 = vld [vmem:[#allocation9 + $0x48] sm:$0xff]  }
 0x173   :  { %v1573_v3 = vld [vmem:[#allocation10 + $0x8] sm:$0xff]  }
 0x175   :  { %628 = vmatpush1.bf16.msra.mxu1 %v1525_v4  ;;  %875 = vmatpush1.bf16.msra.mxu0 %v1528_v5  ;;  %v1574_v4 = vld [vmem:[#allocation9 + $0x8] sm:$0xff]   ;;  %v1575_v5 = vld [vmem:[#allocation10 + $0x50] sm:$0xff]  }
 0x176   :  { %629 = vmatprep.subr.bf16.mxu1 %v1533_v6  ;;  %876 = vmatprep.subr.bf16.mxu0 %v1536_v7  ;;  %v1576_v6 = vld [vmem:[#allocation9 + $0x50] sm:$0xff]  }
 0x177   :  { %v1577_v7 = vld [vmem:[#allocation10 + $0x10] sm:$0xff]  }
 0x179   :  { %630 = vmatpush1.bf16.msra.mxu1 %v1531_v8  ;;  %877 = vmatpush1.bf16.msra.mxu0 %v1534_v9  ;;  %v1578_v8 = vld [vmem:[#allocation9 + $0x10] sm:$0xff]   ;;  %v1579_v9 = vld [vmem:[#allocation10 + $0x58] sm:$0xff]  }
 0x17a   :  { %631 = vmatprep.subr.bf16.mxu1 %v1539_v10  ;;  %878 = vmatprep.subr.bf16.mxu0 %v1542_v11  ;;  %v1580_v10 = vld [vmem:[#allocation9 + $0x58] sm:$0xff]  }
 0x17b   :  { %v1581_v11 = vld [vmem:[#allocation10 + $0x18] sm:$0xff]  }
 0x17d   :  { %632 = vmatpush1.bf16.msra.mxu1 %v1537_v12  ;;  %879 = vmatpush1.bf16.msra.mxu0 %v1540_v13  ;;  %v1582_v12 = vld [vmem:[#allocation9 + $0x18] sm:$0xff]   ;;  %v1583_v13 = vld [vmem:[#allocation10 + $0x60] sm:$0xff]  }
 0x17e   :  { %633 = vmatprep.subr.bf16.mxu1 %v1545_v14  ;;  %880 = vmatprep.subr.bf16.mxu0 %v1548_v15  ;;  %v1584_v14 = vld [vmem:[#allocation9 + $0x60] sm:$0xff]  }
 0x17f   :  { %v1585_v15 = vld [vmem:[#allocation10 + $0x20] sm:$0xff]  }
 0x181   :  { %634 = vmatpush1.bf16.msra.mxu1 %v1543_v16  ;;  %881 = vmatpush1.bf16.msra.mxu0 %v1546_v17  ;;  %v1586_v16 = vld [vmem:[#allocation9 + $0x20] sm:$0xff]   ;;  %v1587_v17 = vld [vmem:[#allocation10 + $0x68] sm:$0xff]  }
 0x182   :  { %635 = vmatprep.subr.bf16.mxu1 %v1551_v18  ;;  %882 = vmatprep.subr.bf16.mxu0 %v1554_v19  ;;  %v1588_v18 = vld [vmem:[#allocation9 + $0x68] sm:$0xff]  }
 0x183   :  { %v1589_v19 = vld [vmem:[#allocation10 + $0x28] sm:$0xff]  }
 0x185   :  { %636 = vmatpush1.bf16.msra.mxu1 %v1549_v20  ;;  %883 = vmatpush1.bf16.msra.mxu0 %v1552_v21  ;;  %v1590_v20 = vld [vmem:[#allocation9 + $0x28] sm:$0xff]   ;;  %v1591_v21 = vld [vmem:[#allocation10 + $0x70] sm:$0xff]  }
 0x186   :  { %637 = vmatprep.subr.bf16.mxu1 %v1557_v22  ;;  %884 = vmatprep.subr.bf16.mxu0 %v1560_v23  ;;  %v1592_v22 = vld [vmem:[#allocation9 + $0x70] sm:$0xff]  }
 0x187   :  { %v1593_v23 = vld [vmem:[#allocation10 + $0x30] sm:$0xff]  }
 0x189   :  { %638 = vmatpush1.bf16.msra.mxu1 %v1555_v24  ;;  %885 = vmatpush1.bf16.msra.mxu0 %v1558_v25  ;;  %v1594_v24 = vld [vmem:[#allocation9 + $0x30] sm:$0xff]   ;;  %v1595_v25 = vld [vmem:[#allocation10 + $0x78] sm:$0xff]  }
 0x18a   :  { %639 = vmatprep.subr.bf16.mxu1 %v1563_v26  ;;  %886 = vmatprep.subr.bf16.mxu0 %v1566_v27  ;;  %v1596_v26 = vld [vmem:[#allocation9 + $0x78] sm:$0xff]  }
 0x18b   :  { %v1597_v27 = vld [vmem:[#allocation10 + $0x38] sm:$0xff]  }
 0x18d   :  { %640 = vmatpush1.bf16.msra.mxu1 %v1561_v28  ;;  %887 = vmatpush1.bf16.msra.mxu0 %v1564_v29  ;;  %v1598_v28 = vld [vmem:[#allocation9 + $0x38] sm:$0xff]   ;;  %v437_v29 = vld [vmem:[%s1937_s6] sm:$0x3] }
 0x18e   :  { %1378 = vmatprep.subr.bf16.mxu1 %v1567_v30  ;;  %1400 = vmatprep.subr.bf16.mxu0 %v1568_v31  ;;  %v684_v30 = vld [vmem:[%s1939_s8] sm:$0x3]  ;;  %v442_v31 = vrot.slane %v437_v29, %v1906_v34  ;;  %v446_v33 = vrot.slane %v437_v29, %v1911_v37 }
 0x18f   :  { %v689_v32 = vrot.slane %v684_v30, %v1906_v34  ;;  %v693_v35 = vrot.slane %v684_v30, %v1911_v37 }
 0x223   :  { %v349_v43 = vpop.f32.mrb[0].mxu1  ;;  %v390_v44 = vpop.f32.mrb[4].mxu0 }
 0x224   :  { %v350_v45 = vadd.f32 %v349_v43, %v214_v39  ;;  %v391_v46 = vadd.f32 %v390_v44, %v222_v40  ;;  %v351_v47 = vpop.f32.mrb[1].mxu1  ;;  %v392_v48 = vpop.f32.mrb[5].mxu0 }
 0x225   :  { %v352_v49 = vadd.f32 %v351_v47, %v218_v41  ;;  %v393_v50 = vadd.f32 %v392_v48, %v226_v42  ;;  %v353_v51 = vpop.f32.mrb[2].mxu1  ;;  %v394_v52 = vpop.f32.mrb[6].mxu0 }
 0x226   :  { %v397_v53 = vmax.f32 %v350_v45, 0.0  ;;  %v399_v54 = vmax.f32 %v391_v46, 0.0  ;;  %v354_v55 = vpop.f32.mrb[3].mxu1  ;;  %v395_v56 = vpop.f32.mrb[7].mxu0 }
 0x227   :  { %v398_v57 = vmax.f32 %v352_v49, 0.0  ;;  %v400_v58 = vmax.f32 %v393_v50, 0.0 }
 0x228   :  { %v401_v63 = vpack.c.bf16 %v397_v53, %v397_v53  ;;  %v403_v0 = vpack.c.bf16 %v399_v54, %v399_v54 }
 0x229   :  { %v402_v59 = vpack.c.bf16 %v398_v57, %v398_v57  ;;  %v404_v60 = vpack.c.bf16 %v400_v58, %v400_v58 }
 0x22b   :  { %641 = vmatprep.mubr.bf16.mxu1 %v402_v59  ;;  %888 = vmatprep.mubr.bf16.mxu0 %v404_v60 }
 0x22c   :  { %642 = vmatmul.mubr.bf16.vlgmr.msra.gmra.mrb[4].mxu1 %v401_v63  ;;  %889 = vmatmul.mubr.bf16.vlgmr.msra.gmra.mrb[8].mxu0 %v403_v0  ;;  %v1374_v63 = vld [vmem:[%s1942_s11] ss:$0 sm:$0xff] }
 0x22d   :  { %1379 = vmatpush3.bf16.msra.mxu1 %v1569_v61  ;;  %1401 = vmatpush3.bf16.msra.mxu0 %v1570_v62 }
 0x22e   :  { %1380 = vmatprep.subr.bf16.mxu1 %v1571_v1  ;;  %1402 = vmatprep.subr.bf16.mxu0 %v1572_v2 }
 0x231   :  { %1381 = vmatpush3.bf16.msra.mxu1 %v1573_v3  ;;  %1403 = vmatpush3.bf16.msra.mxu0 %v1574_v4 }
 0x232   :  { %1382 = vmatprep.subr.bf16.mxu1 %v1575_v5  ;;  %1404 = vmatprep.subr.bf16.mxu0 %v1576_v6 }
 0x235   :  { %1383 = vmatpush3.bf16.msra.mxu1 %v1577_v7  ;;  %1405 = vmatpush3.bf16.msra.mxu0 %v1578_v8 }
 0x236   :  { %1384 = vmatprep.subr.bf16.mxu1 %v1579_v9  ;;  %1406 = vmatprep.subr.bf16.mxu0 %v1580_v10 }
 0x239   :  { %1385 = vmatpush3.bf16.msra.mxu1 %v1581_v11  ;;  %1407 = vmatpush3.bf16.msra.mxu0 %v1582_v12 }
 0x23a   :  { %1386 = vmatprep.subr.bf16.mxu1 %v1583_v13  ;;  %1408 = vmatprep.subr.bf16.mxu0 %v1584_v14 }
 0x23d   :  { %1387 = vmatpush3.bf16.msra.mxu1 %v1585_v15  ;;  %1409 = vmatpush3.bf16.msra.mxu0 %v1586_v16 }
 0x23e   :  { %1388 = vmatprep.subr.bf16.mxu1 %v1587_v17  ;;  %1410 = vmatprep.subr.bf16.mxu0 %v1588_v18 }
 0x241   :  { %1389 = vmatpush3.bf16.msra.mxu1 %v1589_v19  ;;  %1411 = vmatpush3.bf16.msra.mxu0 %v1590_v20 }
 0x242   :  { %1390 = vmatprep.subr.bf16.mxu1 %v1591_v21  ;;  %1412 = vmatprep.subr.bf16.mxu0 %v1592_v22 }
 0x245   :  { %1391 = vmatpush3.bf16.msra.mxu1 %v1593_v23  ;;  %1413 = vmatpush3.bf16.msra.mxu0 %v1594_v24 }
 0x246   :  { %1392 = vmatprep.subr.bf16.mxu1 %v1595_v25  ;;  %1414 = vmatprep.subr.bf16.mxu0 %v1596_v26 }
 0x249   :  { %1393 = vmatpush3.bf16.msra.mxu1 %v1597_v27  ;;  %1415 = vmatpush3.bf16.msra.mxu0 %v1598_v28 }
 0x2ff   :  { %v643_v36 = vpop.f32.mrb[4].mxu1  ;;  %v890_v38 = vpop.f32.mrb[8].mxu0 }
 0x300   :  { %v644_v39 = vadd.f32 %v643_v36, %v442_v31  ;;  %v891_v40 = vadd.f32 %v890_v38, %v689_v32  ;;  %v645_v41 = vpop.f32.mrb[5].mxu1  ;;  %v892_v42 = vpop.f32.mrb[9].mxu0 }
 0x301   :  { %v646_v43 = vadd.f32 %v645_v41, %v446_v33  ;;  %v893_v44 = vadd.f32 %v892_v42, %v693_v35  ;;  %v647_v45 = vpop.f32.mrb[6].mxu1  ;;  %v894_v46 = vpop.f32.mrb[10].mxu0 }
 0x302   :  { %v650_v47 = vmax.f32 %v644_v39, 0.0  ;;  %v897_v48 = vmax.f32 %v891_v40, 0.0  ;;  %v648_v49 = vpop.f32.mrb[7].mxu1  ;;  %v895_v50 = vpop.f32.mrb[11].mxu0 }
 0x303   :  { %v651_v51 = vmax.f32 %v646_v43, 0.0  ;;  %v898_v34 = vmax.f32 %v893_v44, 0.0 }
 0x304   :  { %v899_v54 = vpack.c.bf16 %v650_v47, %v650_v47  ;;  %v933_v37 = vpack.c.bf16 %v897_v48, %v897_v48 }
 0x305   :  { %v900_v52 = vpack.c.bf16 %v651_v51, %v651_v51  ;;  %v934_v53 = vpack.c.bf16 %v898_v34, %v898_v34 }
 0x307   :  { %1095 = vmatprep.mubr.bf16.mxu1 %v934_v53  ;;  %1231 = vmatprep.mubr.bf16.mxu0 %v900_v52 }
 0x308   :  { %1096 = vmatmul.mubr.bf16.vlgmr.msra.gmra.mrb[8].mxu1 %v933_v37  ;;  %1232 = vmatmul.mubr.bf16.vlgmr.msra.gmra.mrb[12].mxu0 %v899_v54 }
 0x3db   :  { %v1394_v55 = vpop.f32.mrb[8].mxu1  ;;  %v1416_v56 = vpop.f32.mrb[12].mxu0 }
 0x3dc   :  { %v1395_v57 = vpop.f32.mrb[9].mxu1  ;;  %v1417_v58 = vpop.f32.mrb[13].mxu0 }
 0x3dd   :  { %v1396_v59 = vadd.f32 %v1395_v57, %v1394_v55  ;;  %v1418_v60 = vadd.f32 %v1417_v58, %v1416_v56  ;;  %v1397_v61 = vpop.f32.mrb[10].mxu1  ;;  %v1419_v62 = vpop.f32.mrb[14].mxu0 }
 0x3de   :  { %v1398_v0 = vpop.f32.mrb[11].mxu1  ;;  %v1420_v1 = vpop.f32.mrb[15].mxu0 }
 0x3df   :  { %v1234_v2 = vadd.f32 %v1418_v60, %v1396_v59 }
 0x3e1   :  { %v1246_v3 = vadd.f32 %v1374_v63, %v1234_v2 }
 0x3e3   :  { %1247 = vst [vmem:[%s1943_s12] sm:$0xff] %v1246_v3 }
 0x3e4   :  { %1252 = vsyncpa [#allocation3], 1 }
 0x3e5   :  { %1253 = vsyncpa [#allocation5], 1 }
 0x3e6   :  { %1254 = vsyncpa [#allocation8], 1 }
 0x3e7   :  { %1255 = vsyncpa [#allocation11], 1 }

</bundles_post_ra>
